<compile_context>
chip_gen: v7x
topology: tpu7x:2x2x1
jax: 0.10.0
libtpu: 0.0.40
codegen_flags: <defaults>
</compile_context>

<pallas_src>
import jax
import jax.numpy as jnp
from jax.experimental import pallas as pl
from jax.experimental.pallas import tpu as pltpu


def _round_up(x: int, m: int) -> int:
    return (x + m - 1) // m * m


def _pick_tile_and_vmem():
    """Per-generation batch tile + scoped-VMEM budget (conservative default)."""
    try:
        kind = jax.devices()[0].device_kind.lower()
    except Exception:  # pragma: no cover - device query is best-effort only
        kind = ""
    if ("v5" in kind) or ("v6" in kind):
        # 128 MiB VMEM parts: bigger tile amortizes per-step grid overhead.
        return 2048, 96 * 1024 * 1024
    # v7x (64 MiB VMEM) and anything unknown: stay well under budget so
    # 2-deep pipelining is preserved.
    return 1024, 48 * 1024 * 1024


def twin_forward_kernel(x1_ref, x2_ref, w1_ref, b1_ref, w2_ref, b2_ref,
                        w3_ref, b3_ref, out_ref):
    """Fused Siamese forward for one batch tile.

    x1_ref, x2_ref : (TB, D)      bf16
    w1_ref         : (D, HIDDEN)  bf16   (resident)
    b1_ref         : (1, HIDDEN)  f32    (resident)
    w2_ref         : (HIDDEN, L)  bf16   (resident)
    b2_ref         : (1, L)       f32    (resident)
    w3_ref         : (1, L)       f32    (resident, head weight as a row)
    b3_ref         : (1, 1)       f32    (resident)
    out_ref        : (TB, 1)      f32
    """
    tb = x1_ref.shape[0]

    # Fuse both branches into one MXU pass per layer: stack the two inputs
    # into a single (2*TB, D) LHS so the shared weights are pushed once.
    x = jnp.concatenate([x1_ref[...], x2_ref[...]], axis=0)          # bf16

    # fc1 + ReLU (f32 accumulation, f32 elementwise — v5e-safe)
    h = jnp.dot(x, w1_ref[...], preferred_element_type=jnp.float32) + b1_ref[...]
    h = jnp.maximum(h, 0.0)

    # latent layer (shared)
    z = jnp.dot(h.astype(w2_ref.dtype), w2_ref[...],
                preferred_element_type=jnp.float32) + b2_ref[...]

    # Split the stacked result back into the two branches (static slices).
    z1 = z[:tb, :]
    z2 = z[tb:, :]

    # Merge: elementwise absolute difference of the two latent codes (f32).
    merged = jnp.abs(z1 - z2)

    # Head Linear(LATENT, 1) as a VPU multiply + row-reduce instead of an
    # N=1 MXU matmul (which would pad the output to 128 lanes).
    out_ref[...] = (jnp.sum(merged * w3_ref[...], axis=-1, keepdims=True)
                    + b3_ref[...])


def twin_network_forward(x1_nchw, x2_nchw, params):
    """Flatten NCHW inputs, tile over batch and call the fused Pallas kernel."""
    w1, b1, w2, b2, w3_row, b3 = params
    B = x1_nchw.shape[0]
    D = x1_nchw.shape[1] * x1_nchw.shape[2] * x1_nchw.shape[3]
    hidden = w1.shape[1]
    latent = w2.shape[1]

    tb_default, vmem_bytes = _pick_tile_and_vmem()

    # bf16 activation stream (halves HBM bytes); accumulation stays f32 in-kernel.
    x1f = x1_nchw.reshape(B, D).astype(jnp.bfloat16)
    x2f = x2_nchw.reshape(B, D).astype(jnp.bfloat16)

    # Batch tile: multiple of 8 (sublane), capped by the per-generation default.
    tb = min(tb_default, _round_up(B, 8))
    b_pad = _round_up(B, tb)
    if b_pad != B:
        pad = ((0, b_pad - B), (0, 0))
        x1f = jnp.pad(x1f, pad)
        x2f = jnp.pad(x2f, pad)

    x_spec = pl.BlockSpec((tb, D), lambda i: (i, 0))

    def resident(shape):
        # Constant block index -> stays in VMEM across all batch tiles.
        return pl.BlockSpec(shape, lambda i: (0, 0))

    out = pl.pallas_call(
        twin_forward_kernel,
        out_shape=jax.ShapeDtypeStruct((b_pad, 1), jnp.float32),
        grid=(b_pad // tb,),
        in_specs=[
            x_spec,                       # x1 tile
            x_spec,                       # x2 tile
            resident((D, hidden)),        # W1 (bf16)
            resident((1, hidden)),        # b1 (f32)
            resident((hidden, latent)),   # W2 (bf16)
            resident((1, latent)),        # b2 (f32)
            resident((1, latent)),        # W3 row (f32)
            resident((1, 1)),             # b3 (f32)
        ],
        out_specs=pl.BlockSpec((tb, 1), lambda i: (i, 0)),
        compiler_params=pltpu.CompilerParams(
            dimension_semantics=("parallel",),
            vmem_limit_bytes=vmem_bytes,
        ),
    )(x1f, x2f, w1, b1, w2, b2, w3_row, b3)

    return out[:B]


def init_params(key, D, hidden, latent):
    """Deterministic init. Weights stored as (in_features, out_features).

    Matmul weights are bf16 (native MXU rate), biases and head weight row are
    f32 (elementwise/head math stays f32).
    """
    k1, k2, k3 = jax.random.split(key, 3)
    s1 = 1.0 / jnp.sqrt(D)
    s2 = 1.0 / jnp.sqrt(hidden)
    s3 = 1.0 / jnp.sqrt(latent)
    w1 = jax.random.uniform(k1, (D, hidden), jnp.float32, -s1, s1).astype(jnp.bfloat16)
    b1 = jnp.zeros((1, hidden), jnp.float32)
    w2 = jax.random.uniform(k2, (hidden, latent), jnp.float32, -s2, s2).astype(jnp.bfloat16)
    b2 = jnp.zeros((1, latent), jnp.float32)
    w3_row = jax.random.uniform(k3, (1, latent), jnp.float32, -s3, s3)   # head as a row
    b3 = jnp.zeros((1, 1), jnp.float32)
    return (w1, b1, w2, b2, w3_row, b3)


def reference_forward(x1_nchw, x2_nchw, params):
    """Pure-JAX reference mirroring the PyTorch config semantics (bf16 matmuls,
    f32 accumulation — same numerics as the kernel)."""
    w1, b1, w2, b2, w3_row, b3 = params
    B = x1_nchw.shape[0]

    def branch(x):
        xf = x.reshape(B, -1).astype(jnp.bfloat16)
        h = jnp.dot(xf, w1, preferred_element_type=jnp.float32) + b1
        h = jnp.maximum(h, 0.0)
        return jnp.dot(h.astype(jnp.bfloat16), w2,
                       preferred_element_type=jnp.float32) + b2

    merged = jnp.abs(branch(x1_nchw) - branch(x2_nchw))
    return jnp.sum(merged * w3_row, axis=-1, keepdims=True) + b3


if __name__ == "__main__":
    # Small shapes consistent with the module's (B, C, H, W) inputs.
    B, C, H, W = 2, 4, 16, 16
    D = C * H * W           # 1024
    HIDDEN = 128
    LATENT = 32

    key = jax.random.PRNGKey(0)
    kx1, kx2, kp = jax.random.split(key, 3)
    x1 = jax.random.normal(kx1, (B, C, H, W), jnp.float32)
    x2 = jax.random.normal(kx2, (B, C, H, W), jnp.float32)
    params = init_params(kp, D, HIDDEN, LATENT)

    out = twin_network_forward(x1, x2, params)
    out = jax.block_until_ready(out)

    ref = reference_forward(x1, x2, params)
    assert out.shape == (B, 1), out.shape
    # bf16 matmul inputs -> looser tolerance than the pure-f32 version.
    assert jnp.allclose(out, ref, atol=2e-2, rtol=2e-2), (out, ref)

    print("KERNEL_OK")
</pallas_src>

<mosaic_0001>
module attributes {stable_mosaic.version = 11 : i64} {
  func.func @twin_forward_kernel(%arg0: i32, %arg1: memref<8x1024xbf16, #tpu.memory_space<vmem>>, %arg2: memref<8x1024xbf16, #tpu.memory_space<vmem>>, %arg3: memref<1024x128xbf16, #tpu.memory_space<vmem>>, %arg4: memref<1x128xf32, #tpu.memory_space<vmem>>, %arg5: memref<128x32xbf16, #tpu.memory_space<vmem>>, %arg6: memref<1x32xf32, #tpu.memory_space<vmem>>, %arg7: memref<1x32xf32, #tpu.memory_space<vmem>>, %arg8: memref<1x1xf32, #tpu.memory_space<vmem>>, %arg9: memref<8x1xf32, #tpu.memory_space<vmem>>) attributes {dimension_semantics = [#tpu.dimension_semantics<parallel>], iteration_bounds = array<i64: 1>, scalar_prefetch = 0 : i64, scratch_operands = 0 : i64, tpu.core_type = #tpu.core_type<tc>, window_params = [{transform_indices = @transform_0, window_bounds = array<i64: 8, 1024>}, {transform_indices = @transform_1, window_bounds = array<i64: 8, 1024>}, {pipeline_mode = #tpu.pipeline_mode<synchronous>, transform_indices = @transform_2, window_bounds = array<i64: 1024, 128>}, {pipeline_mode = #tpu.pipeline_mode<synchronous>, transform_indices = @transform_3, window_bounds = array<i64: 1, 128>}, {pipeline_mode = #tpu.pipeline_mode<synchronous>, transform_indices = @transform_4, window_bounds = array<i64: 128, 32>}, {pipeline_mode = #tpu.pipeline_mode<synchronous>, transform_indices = @transform_5, window_bounds = array<i64: 1, 32>}, {pipeline_mode = #tpu.pipeline_mode<synchronous>, transform_indices = @transform_6, window_bounds = array<i64: 1, 32>}, {pipeline_mode = #tpu.pipeline_mode<synchronous>, transform_indices = @transform_7, window_bounds = array<i64: 1, 1>}, {transform_indices = @transform_8, window_bounds = array<i64: 8, 1>}]} {
    %c0 = arith.constant 0 : index
    %c0_0 = arith.constant 0 : index
    %0 = vector.load %arg1[%c0, %c0_0] : memref<8x1024xbf16, #tpu.memory_space<vmem>>, vector<8x1024xbf16>
    %c0_1 = arith.constant 0 : index
    %c0_2 = arith.constant 0 : index
    %1 = vector.load %arg2[%c0_1, %c0_2] : memref<8x1024xbf16, #tpu.memory_space<vmem>>, vector<8x1024xbf16>
    %2 = tpu.concatenate %0, %1 in 0 : vector<8x1024xbf16>, vector<8x1024xbf16> -> vector<16x1024xbf16>
    %c0_3 = arith.constant 0 : index
    %c0_4 = arith.constant 0 : index
    %3 = vector.load %arg3[%c0_3, %c0_4] : memref<1024x128xbf16, #tpu.memory_space<vmem>>, vector<1024x128xbf16>
    %cst = arith.constant dense<0.000000e+00> : vector<16x128xf32>
    %4 = tpu.matmul %2, %3, %cst {dimension_numbers = #tpu.dot_dimension_numbers<[1], [0], [0], [1], [0, 0, 1, 1], [], []>} : vector<16x1024xbf16>, vector<1024x128xbf16>, vector<16x128xf32> -> vector<16x128xf32>
    %c0_5 = arith.constant 0 : index
    %c0_6 = arith.constant 0 : index
    %5 = vector.load %arg4[%c0_5, %c0_6] : memref<1x128xf32, #tpu.memory_space<vmem>>, vector<1x128xf32>
    %6 = vector.broadcast %5 : vector<1x128xf32> to vector<16x128xf32>
    %7 = arith.addf %4, %6 : vector<16x128xf32>
    %cst_7 = arith.constant 0.000000e+00 : f32
    %8 = vector.broadcast %cst_7 : f32 to vector<16x128xf32>
    %9 = arith.maximumf %7, %8 : vector<16x128xf32>
    %10 = arith.truncf %9 : vector<16x128xf32> to vector<16x128xbf16>
    %c0_8 = arith.constant 0 : index
    %c0_9 = arith.constant 0 : index
    %11 = vector.load %arg5[%c0_8, %c0_9] : memref<128x32xbf16, #tpu.memory_space<vmem>>, vector<128x32xbf16>
    %cst_10 = arith.constant dense<0.000000e+00> : vector<16x32xf32>
    %12 = tpu.matmul %10, %11, %cst_10 {dimension_numbers = #tpu.dot_dimension_numbers<[1], [0], [0], [1], [0, 0, 1, 1], [], []>} : vector<16x128xbf16>, vector<128x32xbf16>, vector<16x32xf32> -> vector<16x32xf32>
    %c0_11 = arith.constant 0 : index
    %c0_12 = arith.constant 0 : index
    %13 = vector.load %arg6[%c0_11, %c0_12] : memref<1x32xf32, #tpu.memory_space<vmem>>, vector<1x32xf32>
    %14 = vector.broadcast %13 : vector<1x32xf32> to vector<16x32xf32>
    %15 = arith.addf %12, %14 : vector<16x32xf32>
    %16 = vector.extract_strided_slice %15 {offsets = [0, 0], sizes = [8, 32], strides = [1, 1]} : vector<16x32xf32> to vector<8x32xf32>
    %17 = vector.extract_strided_slice %15 {offsets = [8, 0], sizes = [8, 32], strides = [1, 1]} : vector<16x32xf32> to vector<8x32xf32>
    %18 = arith.subf %16, %17 : vector<8x32xf32>
    %19 = math.absf %18 : vector<8x32xf32>
    %c0_13 = arith.constant 0 : index
    %c0_14 = arith.constant 0 : index
    %20 = vector.load %arg7[%c0_13, %c0_14] : memref<1x32xf32, #tpu.memory_space<vmem>>, vector<1x32xf32>
    %21 = vector.broadcast %20 : vector<1x32xf32> to vector<8x32xf32>
    %22 = arith.mulf %19, %21 : vector<8x32xf32>
    %cst_15 = arith.constant dense<0.000000e+00> : vector<8xf32>
    %23 = vector.multi_reduction <add>, %22, %cst_15 [1] : vector<8x32xf32> to vector<8xf32>
    %24 = vector.shape_cast %23 : vector<8xf32> to vector<8x1xf32>
    %c0_16 = arith.constant 0 : index
    %c0_17 = arith.constant 0 : index
    %25 = vector.load %arg8[%c0_16, %c0_17] : memref<1x1xf32, #tpu.memory_space<vmem>>, vector<1x1xf32>
    %26 = vector.broadcast %25 : vector<1x1xf32> to vector<8x1xf32>
    %27 = arith.addf %24, %26 : vector<8x1xf32>
    %c0_18 = arith.constant 0 : index
    %c0_19 = arith.constant 0 : index
    %28 = vector.load %arg9[%c0_18, %c0_19] : memref<8x1xf32, #tpu.memory_space<vmem>>, vector<8x1xf32>
    tpu.vector_store %arg9[%c0_18, %c0_19], %27 {strides = array<i32>} : memref<8x1xf32, #tpu.memory_space<vmem>>, vector<8x1xf32>,
    return
  }
  func.func @transform_0(%arg0: i32) -> (i32, i32) {
    %c0_i32 = arith.constant 0 : i32
    %c0_i32_0 = arith.constant 0 : i32
    return %arg0, %c0_i32 : i32, i32
  }
  func.func @transform_1(%arg0: i32) -> (i32, i32) {
    %c0_i32 = arith.constant 0 : i32
    %c0_i32_0 = arith.constant 0 : i32
    return %arg0, %c0_i32 : i32, i32
  }
  func.func @transform_2(%arg0: i32) -> (i32, i32) {
    %c0_i32 = arith.constant 0 : i32
    %c0_i32_0 = arith.constant 0 : i32
    %c0_i32_1 = arith.constant 0 : i32
    return %c0_i32, %c0_i32_0 : i32, i32
  }
  func.func @transform_3(%arg0: i32) -> (i32, i32) {
    %c0_i32 = arith.constant 0 : i32
    %c0_i32_0 = arith.constant 0 : i32
    %c0_i32_1 = arith.constant 0 : i32
    return %c0_i32, %c0_i32_0 : i32, i32
  }
  func.func @transform_4(%arg0: i32) -> (i32, i32) {
    %c0_i32 = arith.constant 0 : i32
    %c0_i32_0 = arith.constant 0 : i32
    %c0_i32_1 = arith.constant 0 : i32
    return %c0_i32, %c0_i32_0 : i32, i32
  }
  func.func @transform_5(%arg0: i32) -> (i32, i32) {
    %c0_i32 = arith.constant 0 : i32
    %c0_i32_0 = arith.constant 0 : i32
    %c0_i32_1 = arith.constant 0 : i32
    return %c0_i32, %c0_i32_0 : i32, i32
  }
  func.func @transform_6(%arg0: i32) -> (i32, i32) {
    %c0_i32 = arith.constant 0 : i32
    %c0_i32_0 = arith.constant 0 : i32
    %c0_i32_1 = arith.constant 0 : i32
    return %c0_i32, %c0_i32_0 : i32, i32
  }
  func.func @transform_7(%arg0: i32) -> (i32, i32) {
    %c0_i32 = arith.constant 0 : i32
    %c0_i32_0 = arith.constant 0 : i32
    %c0_i32_1 = arith.constant 0 : i32
    return %c0_i32, %c0_i32_0 : i32, i32
  }
  func.func @transform_8(%arg0: i32) -> (i32, i32) {
    %c0_i32 = arith.constant 0 : i32
    %c0_i32_0 = arith.constant 0 : i32
    return %arg0, %c0_i32 : i32, i32
  }
}

</mosaic_0001>

<bundles_post_ra>
// kernel: tpu_custom_call.1
= control target key start
LH: loop header
LB: loop body
LE: loop exit
PB: predicated region body
PF: predicated region fallthrough
CT: control target
= control target key end

     0   :  { %s1413_s0 = inlined_call_operand.vmem [shape: bf16[8,1024], index: 0, kind: input, shape index: {}]   ;;  %s1414_s1 = inlined_call_operand.vmem [shape: bf16[8,1024], index: 1, kind: input, shape index: {}]   ;;  %s1415_s2 = inlined_call_operand.hbm [shape: bf16[1024,128], index: 2, kind: input, shape index: {}]   ;;  %s1416_s3 = inlined_call_operand.vmem [shape: f32[1,128], index: 3, kind: input, shape index: {}]   ;;  %s1417_s4 = inlined_call_operand.vmem [shape: bf16[128,32], index: 4, kind: input, shape index: {}]   ;;  %s1418_s5 = inlined_call_operand.vmem [shape: f32[1,32], index: 5, kind: input, shape index: {}]   ;;  %s1419_s6 = inlined_call_operand.vmem [shape: f32[1,32], index: 6, kind: input, shape index: {}]   ;;  %s1420_s7 = inlined_call_operand.<no memory space> [shape: f32[1,1], index: 7, kind: input, shape index: {}]   ;;  %s1421_s8 = inlined_call_operand.vmem [shape: f32[8,1], index: 8, kind: output, shape index: {}]  }
   0x1   :  { %v13_v0 = vstv %s1420_s7 }
   0x2   :  { %14 = vst [vmem:[#allocation2] sm:$0x1] %v13_v0 }
   0x3   :  { %15 = vsyncpa [#allocation4], 0  ;;  %s1280_s29 = smov [#allocation3]   ;;  %s1256_s11 = scalar_lea.hbm %s1415_s2, 8192 }
   0x4   :  { %s25_s30 = sshll.u32 %s1280_s29, 4  ;;  %p1257_p0 = scmp.ne.s32.totalorder %s1415_s2, %s1256_s11  ;;  %s26_s30 = int_to_ptr.vmem [resolvable:$true] %s25_s30 }
   0x5   :  { %p1260_p1 = scmp.lt.u32.totalorder %s1256_s11, %s1415_s2 }
   0x7   :  { %p1262_p2 = pnand %p1260_p1, %p1257_p0 }
   0x9   :  { %1265 = shalt.err (!%p1262_p2)
}
   0xa   :  { %s1266_s7 = scalar_lea.vmem %s26_s30, 8192  ;;  %p1271_p4 = scmp.lt.s32.totalorder %s26_s30, %s26_s30 }
   0xb   :  { %p1267_p3 = scmp.ne.s32.totalorder %s26_s30, %s1266_s7  ;;  %p1272_p5 = scmp.lt.s32.totalorder %s1266_s7, %s1266_s7 }
   0xd   :  { %p1273_p6 = por %p1272_p5, %p1271_p4 }
   0xf   :  { %p1274_p7 = pnand %p1273_p6, %p1267_p3 }
  0x11   :  { %1277 = shalt.err (!%p1274_p7)
}
  0x12   :  { %s1281_s16 = smov 64   ;;  %s1282_s17 = smov 4  }
  0x13   :  { %31 = dma.hbm_to_vmem [thread:$0]  %s1415_s2, 8192, %s26_s30, [#allocation4], %s1281_s16, %s1281_s16, %s1282_s17  }
  0x14   :  { %1278 = dma.done.wait [#allocation4], 8192  }
  0x15   :  { %1279 = vsyncadd [#allocation4], 4294959104  ;;  %v1168_v1 = vld [vmem:[#allocation3 + $0x40] sm:$0xff]   ;;  %v1172_v5 = vld [vmem:[#allocation3 + $0x48] sm:$0xff]   ;;  %vm94_vm0 = vcmask 1043456   ;;  %vm1284_vm1 = vmmov 0  }
  0x16   :  { %v1169_v2 = vld [vmem:[#allocation3 + $0xc0] sm:$0xff]   ;;  %1046 = vmatprep.subr.bf16.mxu0 %v1168_v1  ;;  %v1173_v6 = vld [vmem:[#allocation3 + $0xc8] sm:$0xff]   ;;  %v1176_v9 = vld [vmem:[#allocation3 + $0x50] sm:$0xff]   ;;  %vm935_vm2 = vcmask 261120   ;;  %vm947_vm3 = vcmask 7168  }
  0x17   :  { %v1170_v3 = vld [vmem:[#allocation3] sm:$0xff]   ;;  %1068 = vmatprep.subr.bf16.mxu1 %v1169_v2  ;;  %v1174_v7 = vld [vmem:[#allocation3 + $0x8] sm:$0xff]   ;;  %v1177_v10 = vld [vmem:[#allocation3 + $0xd0] sm:$0xff]  }
  0x18   :  { %v1171_v4 = vld [vmem:[#allocation3 + $0x80] sm:$0xff]   ;;  %1047 = vmatpush3.bf16.msra.mxu0 %v1170_v3  ;;  %v1175_v8 = vld [vmem:[#allocation3 + $0x88] sm:$0xff]   ;;  %v1178_v11 = vld [vmem:[#allocation3 + $0x10] sm:$0xff]  }
  0x19   :  { %1069 = vmatpush3.bf16.msra.mxu1 %v1171_v4  ;;  %1048 = vmatprep.subr.bf16.mxu0 %v1172_v5  ;;  %v1179_v12 = vld [vmem:[#allocation3 + $0x90] sm:$0xff]   ;;  %v1180_v13 = vld [vmem:[#allocation3 + $0x58] sm:$0xff]   ;;  %v1184_v17 = vld [vmem:[#allocation3 + $0x60] sm:$0xff]  }
  0x1a   :  { %1070 = vmatprep.subr.bf16.mxu1 %v1173_v6  ;;  %v1181_v14 = vld [vmem:[#allocation3 + $0xd8] sm:$0xff]   ;;  %v1185_v18 = vld [vmem:[#allocation3 + $0xe0] sm:$0xff]   ;;  %v1188_v21 = vld [vmem:[#allocation3 + $0x68] sm:$0xff]  }
  0x1b   :  { %v1182_v15 = vld [vmem:[#allocation3 + $0x18] sm:$0xff]   ;;  %v1186_v19 = vld [vmem:[#allocation3 + $0x20] sm:$0xff]   ;;  %v1189_v22 = vld [vmem:[#allocation3 + $0xe8] sm:$0xff]  }
  0x1c   :  { %1049 = vmatpush3.bf16.msra.mxu0 %v1174_v7  ;;  %v1183_v16 = vld [vmem:[#allocation3 + $0x98] sm:$0xff]   ;;  %v1187_v20 = vld [vmem:[#allocation3 + $0xa0] sm:$0xff]   ;;  %v1190_v23 = vld [vmem:[#allocation3 + $0x28] sm:$0xff]  }
  0x1d   :  { %1071 = vmatpush3.bf16.msra.mxu1 %v1175_v8  ;;  %1050 = vmatprep.subr.bf16.mxu0 %v1176_v9  ;;  %v1191_v24 = vld [vmem:[#allocation3 + $0xa8] sm:$0xff]   ;;  %v1192_v25 = vld [vmem:[#allocation3 + $0x70] sm:$0xff]   ;;  %v1196_v29 = vld [vmem:[#allocation3 + $0x78] sm:$0xff]  }
  0x1e   :  { %1072 = vmatprep.subr.bf16.mxu1 %v1177_v10  ;;  %v1193_v26 = vld [vmem:[#allocation3 + $0xf0] sm:$0xff]   ;;  %v1197_v30 = vld [vmem:[#allocation3 + $0xf8] sm:$0xff]   ;;  %v47_v35 = vld [vmem:[%s1413_s0 + $0x8] sm:$0xff] }
  0x1f   :  { %v1194_v27 = vld [vmem:[#allocation3 + $0x30] sm:$0xff]   ;;  %v1198_v31 = vld [vmem:[#allocation3 + $0x38] sm:$0xff]   ;;  %v51_v38 = vld [vmem:[%s1414_s1 + $0x8] sm:$0xff]  ;;  %v957_v39 = vcombine.high %v47_v35, %v47_v35  ;;  %v956_v43 = vcombine.low %v47_v35, %v47_v35 }
  0x20   :  { %1051 = vmatpush3.bf16.msra.mxu0 %v1178_v11  ;;  %v1195_v28 = vld [vmem:[#allocation3 + $0xb0] sm:$0xff]   ;;  %v1199_v32 = vld [vmem:[#allocation3 + $0xb8] sm:$0xff]   ;;  %v965_v41 = vcombine.high %v51_v38, %v51_v38  ;;  %v964_v44 = vcombine.low %v51_v38, %v51_v38  ;;  %v1208_v45 = vld [vmem:[#allocation3 + $0x140] sm:$0xff]  }
  0x21   :  { %1073 = vmatpush3.bf16.msra.mxu1 %v1179_v12  ;;  %1052 = vmatprep.subr.bf16.mxu0 %v1180_v13  ;;  %v46_v33 = vld [vmem:[%s1413_s0] sm:$0xff]  ;;  %v1212_v53 = vld [vmem:[#allocation3 + $0x148] sm:$0xff]   ;;  %v1216_v57 = vld [vmem:[#allocation3 + $0x150] sm:$0xff]  }
  0x22   :  { %1074 = vmatprep.subr.bf16.mxu1 %v1181_v14  ;;  %v50_v34 = vld [vmem:[%s1414_s1] sm:$0xff]  ;;  %v955_v36 = vcombine.high %v46_v33, %v46_v33  ;;  %v954_v40 = vcombine.low %v46_v33, %v46_v33  ;;  %v109_v48 = vsel %vm94_vm0, %v957_v39, %v965_v41  ;;  %v105_v50 = vsel %vm94_vm0, %v956_v43, %v964_v44  ;;  %v1213_v54 = vld [vmem:[#allocation3 + $0x1c8] sm:$0xff]   ;;  %v1217_v58 = vld [vmem:[#allocation3 + $0x1d0] sm:$0xff]  }
  0x23   :  { %v963_v37 = vcombine.high %v50_v34, %v50_v34  ;;  %v962_v42 = vcombine.low %v50_v34, %v50_v34  ;;  %v1209_v47 = vld [vmem:[#allocation3 + $0x1c0] sm:$0xff]   ;;  %719 = vmatprep.mubr.bf16.mxu1 %v109_v48  ;;  %v1214_v55 = vld [vmem:[#allocation3 + $0x108] sm:$0xff]   ;;  %v1218_v59 = vld [vmem:[#allocation3 + $0x110] sm:$0xff]   ;;  %v1283_v34 = vmov 0.0  }
  0x24   :  { %1053 = vmatpush3.bf16.msra.mxu0 %v1182_v15  ;;  %v1210_v51 = vld [vmem:[#allocation3 + $0x100] sm:$0xff]   ;;  %v1215_v56 = vld [vmem:[#allocation3 + $0x188] sm:$0xff]   ;;  %v1219_v60 = vld [vmem:[#allocation3 + $0x190] sm:$0xff]  }
  0x25   :  { %1075 = vmatpush3.bf16.msra.mxu1 %v1183_v16  ;;  %1054 = vmatprep.subr.bf16.mxu0 %v1184_v17  ;;  %v101_v46 = vsel %vm94_vm0, %v955_v36, %v963_v37  ;;  %v97_v49 = vsel %vm94_vm0, %v954_v40, %v962_v42  ;;  %v1211_v52 = vld [vmem:[#allocation3 + $0x180] sm:$0xff]   ;;  %v1220_v61 = vld [vmem:[#allocation3 + $0x158] sm:$0xff]   ;;  %v1228_v5 = vld [vmem:[#allocation3 + $0x168] sm:$0xff]  }
  0x26   :  { %1076 = vmatprep.subr.bf16.mxu1 %v1185_v18  ;;  %678 = vmatprep.mubr.bf16.mxu0 %v101_v46  ;;  %v1221_v62 = vld [vmem:[#allocation3 + $0x1d8] sm:$0xff]   ;;  %v1224_v1 = vld [vmem:[#allocation3 + $0x160] sm:$0xff]   ;;  %v1229_v6 = vld [vmem:[#allocation3 + $0x1e8] sm:$0xff]  }
  0x27   :  { %v1222_v63 = vld [vmem:[#allocation3 + $0x118] sm:$0xff]   ;;  %v1225_v2 = vld [vmem:[#allocation3 + $0x1e0] sm:$0xff]   ;;  %v1230_v7 = vld [vmem:[#allocation3 + $0x128] sm:$0xff]  }
  0x28   :  { %1055 = vmatpush3.bf16.msra.mxu0 %v1186_v19  ;;  %v1223_v0 = vld [vmem:[#allocation3 + $0x198] sm:$0xff]   ;;  %v1226_v3 = vld [vmem:[#allocation3 + $0x120] sm:$0xff]   ;;  %v1231_v8 = vld [vmem:[#allocation3 + $0x1a8] sm:$0xff]  }
  0x29   :  { %1077 = vmatpush3.bf16.msra.mxu1 %v1187_v20  ;;  %1056 = vmatprep.subr.bf16.mxu0 %v1188_v21  ;;  %v1227_v4 = vld [vmem:[#allocation3 + $0x1a0] sm:$0xff]   ;;  %v1232_v9 = vld [vmem:[#allocation3 + $0x170] sm:$0xff]   ;;  %v1236_v13 = vld [vmem:[#allocation3 + $0x178] sm:$0xff]  }
  0x2a   :  { %1078 = vmatprep.subr.bf16.mxu1 %v1189_v22  ;;  %v1233_v10 = vld [vmem:[#allocation3 + $0x1f0] sm:$0xff]   ;;  %v1237_v14 = vld [vmem:[#allocation3 + $0x1f8] sm:$0xff]   ;;  %v1249_v35 = vld [vmem:[%s1417_s4 + $0x8] sm:$0xff]  }
  0x2b   :  { %v1234_v11 = vld [vmem:[#allocation3 + $0x130] sm:$0xff]   ;;  %v1238_v15 = vld [vmem:[#allocation3 + $0x138] sm:$0xff]   ;;  %v1253_v39 = vld [vmem:[%s1417_s4 + $0x28] sm:$0xff]  }
  0x2c   :  { %1057 = vmatpush3.bf16.msra.mxu0 %v1190_v23  ;;  %v1235_v12 = vld [vmem:[#allocation3 + $0x1b0] sm:$0xff]   ;;  %v1239_v16 = vld [vmem:[#allocation3 + $0x1b8] sm:$0xff]  }
  0x2d   :  { %1079 = vmatpush3.bf16.msra.mxu1 %v1191_v24  ;;  %1058 = vmatprep.subr.bf16.mxu0 %v1192_v25  ;;  %v48_v17 = vld [vmem:[%s1413_s0 + $0x10] sm:$0xff]  ;;  %v49_v21 = vld [vmem:[%s1413_s0 + $0x18] sm:$0xff]  ;;  %v1248_v33 = vld [vmem:[%s1417_s4] sm:$0xff]  }
  0x2e   :  { %1080 = vmatprep.subr.bf16.mxu1 %v1193_v26  ;;  %v52_v18 = vld [vmem:[%s1414_s1 + $0x10] sm:$0xff]  ;;  %v959_v19 = vcombine.high %v48_v17, %v48_v17  ;;  %v53_v22 = vld [vmem:[%s1414_s1 + $0x18] sm:$0xff]  ;;  %v958_v23 = vcombine.low %v48_v17, %v48_v17  ;;  %v961_v25 = vcombine.high %v49_v21, %v49_v21  ;;  %v1252_v38 = vld [vmem:[%s1417_s4 + $0x20] sm:$0xff]  }
  0x2f   :  { %v967_v20 = vcombine.high %v52_v18, %v52_v18  ;;  %v966_v24 = vcombine.low %v52_v18, %v52_v18  ;;  %v969_v26 = vcombine.high %v53_v22, %v53_v22  ;;  %v1250_v36 = vld [vmem:[%s1417_s4 + $0x10] sm:$0xff]   ;;  %v1251_v37 = vld [vmem:[%s1417_s4 + $0x18] sm:$0xff]   ;;  %v970_v44 = vld [vmem:[%s1416_s3] ss:$0 sm:$0xff] }
  0x30   :  { %1059 = vmatpush3.bf16.msra.mxu0 %v1194_v27  ;;  %v960_v27 = vcombine.low %v49_v21, %v49_v21  ;;  %v1254_v40 = vld [vmem:[%s1417_s4 + $0x30] sm:$0xff]   ;;  %v1255_v41 = vld [vmem:[%s1417_s4 + $0x38] sm:$0xff]  }
  0x31   :  { %1081 = vmatpush3.bf16.msra.mxu1 %v1195_v28  ;;  %1060 = vmatprep.subr.bf16.mxu0 %v1196_v29  ;;  %v117_v28 = vsel %vm94_vm0, %v959_v19, %v967_v20  ;;  %v113_v29 = vsel %vm94_vm0, %v958_v23, %v966_v24 }
  0x32   :  { %1082 = vmatprep.subr.bf16.mxu1 %v1197_v30  ;;  %v968_v30 = vcombine.low %v53_v22, %v53_v22  ;;  %v1044_v22 = vld [vmem:[%s1419_s6] ss:$0 sm:$0xff] }
  0x34   :  { %1061 = vmatpush3.bf16.msra.mxu0 %v1198_v31  ;;  %v125_v31 = vsel %vm94_vm0, %v961_v25, %v969_v26  ;;  %v1045_v26 = vld [vmem:[#allocation2] ss:$0 sm:$0xff] }
  0x35   :  { %1083 = vmatpush3.bf16.msra.mxu1 %v1199_v32  ;;  %1090 = vmatprep.subr.bf16.mxu0 %v1208_v45  ;;  %v121_v32 = vsel %vm94_vm0, %v960_v27, %v968_v30 }
  0x36   :  { %1112 = vmatprep.subr.bf16.mxu1 %v1209_v47 }
  0x37   :  { %679 = vmatmul.mubr.bf16.vlgmr.msra.gmra.mrb[0].mxu0 %v97_v49 }
  0x38   :  { %720 = vmatmul.mubr.bf16.vlgmr.msra.gmra.mrb[0].mxu1 %v105_v50  ;;  %1091 = vmatpush3.bf16.msra.mxu0 %v1210_v51 }
  0x39   :  { %1113 = vmatpush3.bf16.msra.mxu1 %v1211_v52  ;;  %1092 = vmatprep.subr.bf16.mxu0 %v1212_v53 }
  0x3a   :  { %1114 = vmatprep.subr.bf16.mxu1 %v1213_v54  ;;  %760 = vmatprep.mubr.bf16.mxu0 %v117_v28 }
  0x3b   :  { %801 = vmatprep.mubr.bf16.mxu1 %v125_v31 }
  0x3c   :  { %1093 = vmatpush3.bf16.msra.mxu0 %v1214_v55 }
  0x3d   :  { %1115 = vmatpush3.bf16.msra.mxu1 %v1215_v56  ;;  %1094 = vmatprep.subr.bf16.mxu0 %v1216_v57 }
  0x3e   :  { %1116 = vmatprep.subr.bf16.mxu1 %v1217_v58 }
  0x40   :  { %1095 = vmatpush3.bf16.msra.mxu0 %v1218_v59 }
  0x41   :  { %1117 = vmatpush3.bf16.msra.mxu1 %v1219_v60  ;;  %1096 = vmatprep.subr.bf16.mxu0 %v1220_v61 }
  0x42   :  { %1118 = vmatprep.subr.bf16.mxu1 %v1221_v62 }
  0x44   :  { %1097 = vmatpush3.bf16.msra.mxu0 %v1222_v63 }
  0x45   :  { %1119 = vmatpush3.bf16.msra.mxu1 %v1223_v0  ;;  %1098 = vmatprep.subr.bf16.mxu0 %v1224_v1 }
  0x46   :  { %1120 = vmatprep.subr.bf16.mxu1 %v1225_v2 }
  0x48   :  { %1099 = vmatpush3.bf16.msra.mxu0 %v1226_v3 }
  0x49   :  { %1121 = vmatpush3.bf16.msra.mxu1 %v1227_v4  ;;  %1100 = vmatprep.subr.bf16.mxu0 %v1228_v5 }
  0x4a   :  { %1122 = vmatprep.subr.bf16.mxu1 %v1229_v6 }
  0x4c   :  { %1101 = vmatpush3.bf16.msra.mxu0 %v1230_v7 }
  0x4d   :  { %1123 = vmatpush3.bf16.msra.mxu1 %v1231_v8  ;;  %1102 = vmatprep.subr.bf16.mxu0 %v1232_v9 }
  0x4e   :  { %1124 = vmatprep.subr.bf16.mxu1 %v1233_v10 }
  0x50   :  { %1103 = vmatpush3.bf16.msra.mxu0 %v1234_v11 }
  0x51   :  { %1125 = vmatpush3.bf16.msra.mxu1 %v1235_v12  ;;  %1104 = vmatprep.subr.bf16.mxu0 %v1236_v13 }
  0x52   :  { %1126 = vmatprep.subr.bf16.mxu1 %v1237_v14  ;;  %v1035_v14 = vld [vmem:[%s1418_s5] ss:$0 sm:$0xff] }
  0x54   :  { %1105 = vmatpush3.bf16.msra.mxu0 %v1238_v15 }
  0x55   :  { %1127 = vmatpush3.bf16.msra.mxu1 %v1239_v16  ;;  %1143 = vmatprep.subr.bf16.mxu0 %v1283_v34 }
  0x57   :  { %761 = vmatmul.mubr.bf16.vlgmr.msra.gmra.mrb[4].mxu0 %v113_v29 }
  0x58   :  { %802 = vmatmul.mubr.bf16.vlgmr.msra.gmra.mrb[4].mxu1 %v121_v32  ;;  %1144 = vmatpush3.bf16.msra.mxu0 %v1248_v33 }
  0x59   :  { %1145 = vmatprep.subr.bf16.mxu0 %v1283_v34  ;;  %1159 = vmatprep.mubr.msk.bf16.mxu0 %vm1284_vm1, %v1283_v34 }
  0x5c   :  { %1146 = vmatpush3.bf16.msra.mxu0 %v1249_v35 }
  0x5d   :  { %1147 = vmatprep.subr.bf16.mxu0 %v1283_v34 }
  0x60   :  { %1148 = vmatpush3.bf16.msra.mxu0 %v1250_v36 }
  0x61   :  { %1149 = vmatprep.subr.bf16.mxu0 %v1283_v34 }
  0x64   :  { %1150 = vmatpush3.bf16.msra.mxu0 %v1251_v37 }
  0x65   :  { %1151 = vmatprep.subr.bf16.mxu0 %v1283_v34 }
  0x68   :  { %1152 = vmatpush3.bf16.msra.mxu0 %v1252_v38 }
  0x69   :  { %1153 = vmatprep.subr.bf16.mxu0 %v1283_v34 }
  0x6c   :  { %1154 = vmatpush3.bf16.msra.mxu0 %v1253_v39 }
  0x6d   :  { %1155 = vmatprep.subr.bf16.mxu0 %v1283_v34 }
  0x70   :  { %1156 = vmatpush3.bf16.msra.mxu0 %v1254_v40 }
  0x71   :  { %1157 = vmatprep.subr.bf16.mxu0 %v1283_v34 }
  0x74   :  { %1158 = vmatpush3.bf16.msra.mxu0 %v1255_v41 }
 0x10a   :  { %v1062_v42 = vpop.f32.mrb[0].mxu0 }
 0x10b   :  { %v1084_v43 = vpop.f32.mrb[0].mxu1  ;;  %v1063_v45 = vpop.f32.mrb[1].mxu0 }
 0x10c   :  { %v1064_v46 = vadd.f32 %v1063_v45, %v1062_v42  ;;  %v1085_v47 = vpop.f32.mrb[1].mxu1  ;;  %v1065_v48 = vpop.f32.mrb[2].mxu0 }
 0x10d   :  { %v1086_v49 = vadd.f32 %v1085_v47, %v1084_v43  ;;  %v1087_v50 = vpop.f32.mrb[2].mxu1  ;;  %v1066_v51 = vpop.f32.mrb[3].mxu0 }
 0x10e   :  { %v681_v52 = vadd.f32 %v1064_v46, %v970_v44  ;;  %v1067_v53 = vadd.f32 %v1066_v51, %v1065_v48  ;;  %v1088_v54 = vpop.f32.mrb[3].mxu1 }
 0x10f   :  { %v1089_v55 = vadd.f32 %v1088_v54, %v1087_v50 }
 0x110   :  { %v722_v56 = vadd.f32 %v1086_v49, %v681_v52  ;;  %v684_v57 = vadd.f32 %v1067_v53, %v970_v44 }
 0x112   :  { %v725_v58 = vadd.f32 %v1089_v55, %v684_v57 }
 0x12a   :  { %v1106_v59 = vpop.f32.mrb[4].mxu0 }
 0x12b   :  { %v1128_v60 = vpop.f32.mrb[4].mxu1  ;;  %v1107_v61 = vpop.f32.mrb[5].mxu0 }
 0x12c   :  { %v1108_v62 = vadd.f32 %v1107_v61, %v1106_v59  ;;  %v1129_v63 = vpop.f32.mrb[5].mxu1  ;;  %v1109_v0 = vpop.f32.mrb[6].mxu0 }
 0x12d   :  { %v1130_v1 = vadd.f32 %v1129_v63, %v1128_v60  ;;  %v1131_v2 = vpop.f32.mrb[6].mxu1  ;;  %v1110_v3 = vpop.f32.mrb[7].mxu0 }
 0x12e   :  { %v763_v4 = vadd.f32 %v1108_v62, %v722_v56  ;;  %v1111_v5 = vadd.f32 %v1110_v3, %v1109_v0  ;;  %v1132_v6 = vpop.f32.mrb[7].mxu1 }
 0x12f   :  { %v1133_v7 = vadd.f32 %v1132_v6, %v1131_v2 }
 0x130   :  { %v804_v8 = vadd.f32 %v1130_v1, %v763_v4  ;;  %v766_v9 = vadd.f32 %v1111_v5, %v725_v58 }
 0x132   :  { %v807_v10 = vadd.f32 %v1133_v7, %v766_v9  ;;  %v810_v11 = vmax.f32 %v804_v8, 0.0 }
 0x134   :  { %v811_v12 = vmax.f32 %v807_v10, 0.0 }
 0x136   :  { %v812_v13 = vpack.c.bf16 %v811_v12, %v810_v11 }
 0x138   :  { %1160 = vmatmul.mubr.bf16.vlgmr.msra.gmra.mrb[8].mxu0 %v812_v13 }
 0x20b   :  { %v918_v15 = vpop.f32.mrb[8].mxu0 }
 0x20c   :  { %v1161_v16 = vpop.f32.mrb[9].mxu0  ;;  %v919_v18 = vadd.f32 %v1035_v14, %v918_v15 }
 0x20d   :  { %v921_v17 = vpop.f32.mrb[10].mxu0 }
 0x20e   :  { %v922_v19 = vadd.f32 %v1035_v14, %v921_v17  ;;  %v1162_v20 = vpop.f32.mrb[11].mxu0 }
 0x210   :  { %v925_v21 = vsub.f32 %v919_v18, %v922_v19 }
 0x212   :  { %v926_v23 = vand.u32 2147483647, %v925_v21 }
 0x214   :  { %v934_v24 = vmul.f32 %v1044_v22, %v926_v23 }
 0x216   :  { %v936_v25 = vsel %vm935_vm2, %v934_v24, 0.0 }
 0x217   :  { %937 = vadd.xlane.f32.xlu0 %v936_v25 }
 0x2a4   :  { %v938_v27 = vpop.xlane.xlu0 %937 }
 0x2a5   :  { %v946_v28 = vadd.f32 %v1045_v26, %v938_v27 }
 0x2a7   :  { %948 = vst.msk [vmem:[%s1421_s8] sm:$0xff] %vm947_vm3, %v946_v28 }
 0x2a8   :  { %953 = vsyncpa [#allocation4], 1 }

</bundles_post_ra>
